<compile_context>
chip_gen: v6e
topology: v6e:2x2x1
jax: 0.10.0
libtpu: 0.0.40
codegen_flags: <defaults>
</compile_context>

<pallas_src>
import numpy as np

import jax
import jax.numpy as jnp
from jax.experimental import pallas as pl
from jax.experimental.pallas import tpu as pltpu

_NEG_SLOPE = 0.01


# --------------------------------------------------------------------------- #
# Kernel
# --------------------------------------------------------------------------- #
def _make_kernel(nlayers, islast, negative_slope, skip_mode, slice_start,
                 out_f, matmul_dtype):
    def kernel(*refs):
        # refs = (x_ref, w0, b0, w1, b1, ..., [sel_ref], o_ref)
        x_ref = refs[0]
        o_ref = refs[-1]
        if skip_mode == "gather":
            sel_ref = refs[-2]
            wb = refs[1:-2]
        else:
            wb = refs[1:-1]

        x = x_ref[...]                                    # (TN, in_f)
        r = x
        for i in range(nlayers):                          # static unroll
            w = wb[2 * i][...]                            # (d_in, d_out)
            b = wb[2 * i + 1][...]                        # (1,    d_out)
            lhs = r.astype(matmul_dtype) if matmul_dtype is not None else r
            r = jnp.dot(lhs, w, preferred_element_type=jnp.float32) + b
            if not (islast and i == nlayers - 1):
                # LeakyReLU as mul+max (cheaper than compare+select).
                r = jnp.maximum(r, negative_slope * r)

        # Skip connection — only the gather+pad case pays an extra matmul.
        if skip_mode == "gather":
            r = r + jnp.dot(x, sel_ref[...], preferred_element_type=jnp.float32)
        elif skip_mode == "identity":
            r = r + x
        elif skip_mode == "slice":
            r = r + x[:, slice_start:slice_start + out_f]
        # skip_mode == "none": nothing to add.

        o_ref[...] = r.astype(o_ref.dtype)

    return kernel


# --------------------------------------------------------------------------- #
# Static skip-connection configuration
# --------------------------------------------------------------------------- #
def _skip_config(in_f, out_f, skipindices, n_params, n_vars, isfirst, islast,
                 noskipping):
    if noskipping:
        return "none", 0
    if in_f < out_f:
        return "gather", 0
    if out_f < in_f:
        start = n_params if (islast and len(skipindices) > n_vars) else 0
        return "slice", start
    return "identity", 0


def _build_skip_matrix(in_f, out_f, skipindices, n_params, n_vars, isfirst,
                       islast, noskipping, dtype):
    """Dense selection matrix so that identity == x @ sel (static config)."""
    sel = np.zeros((in_f, out_f), dtype=np.float32)
    if not noskipping:
        if in_f < out_f:
            rows = list(skipindices) if isfirst else list(range(len(skipindices)))
            for c, rw in enumerate(rows):
                sel[rw, c] = 1.0
        elif out_f < in_f:
            start = n_params if (islast and len(skipindices) > n_vars) else 0
            for c in range(out_f):
                sel[start + c, c] = 1.0
        else:
            for c in range(in_f):
                sel[c, c] = 1.0
    return jnp.asarray(sel, dtype=dtype)


# --------------------------------------------------------------------------- #
# VMEM-budgeted tile planning
# --------------------------------------------------------------------------- #
def _plan_tiles(N, in_f, out_f, itemsize, resident_bytes, tile_n_req,
                budget_bytes):
    # Pipeline double-buffers every input (including grid-invariant weights).
    fixed = 2 * resident_bytes
    per_row = 2 * (in_f + out_f) * itemsize          # 2x-buffered x tile + out tile
    avail = max(budget_bytes - fixed, 8 * per_row)
    cap = max(8, int(avail // per_row))
    tile_n = min(tile_n_req, N, cap)
    if tile_n < N:
        tile_n = max(8, (tile_n // 8) * 8)           # (8,128) sublane constraint
    needed = fixed + per_row * tile_n + (2 << 20)    # + compiler scratch headroom
    vmem_limit = int(min(max(needed * 1.5, 32 << 20), 60 << 20))
    return tile_n, vmem_limit


# --------------------------------------------------------------------------- #
# Wrapper
# --------------------------------------------------------------------------- #
def linear_with_skip_connection(x, weights, biases, *, skipindices, n_params,
                                n_vars, isfirst=False, islast=False,
                                noskipping=False, negative_slope=_NEG_SLOPE,
                                tile_n=1024, matmul_dtype=None,
                                vmem_budget_bytes=40 << 20):
    """x: [N, in_f].  weights[i]: [d_in_i, d_out_i] (x @ W layout).
    biases[i]: [d_out_i].  Returns [N, out_f]."""
    N, in_f = x.shape
    out_f = weights[-1].shape[1]
    nlayers = len(weights)
    assert len(biases) == nlayers

    skip_mode, slice_start = _skip_config(
        in_f, out_f, skipindices, n_params, n_vars, isfirst, islast, noskipping)

    weights = list(weights)
    # Fold the (purely linear) skip into the single last-layer weight when the
    # layer has no trailing activation: kernel becomes one matmul + bias.
    if nlayers == 1 and islast and skip_mode != "none" and matmul_dtype is None:
        sel = _build_skip_matrix(in_f, out_f, skipindices, n_params, n_vars,
                                 isfirst, islast, noskipping, weights[0].dtype)
        weights[0] = weights[0] + sel
        skip_mode = "none"

    if matmul_dtype is not None:
        weights = [w.astype(matmul_dtype) for w in weights]

    biases2 = [b.reshape(1, -1) for b in biases]

    extra_args, extra_specs = [], []
    if skip_mode == "gather":
        sel = _build_skip_matrix(in_f, out_f, skipindices, n_params, n_vars,
                                 isfirst, islast, noskipping, x.dtype)
        extra_args.append(sel)
        extra_specs.append(pl.BlockSpec(sel.shape, lambda i: (0, 0)))

    resident_bytes = (
        sum(int(w.size) * w.dtype.itemsize for w in weights)
        + sum(int(b.size) * b.dtype.itemsize for b in biases2)
        + sum(int(a.size) * a.dtype.itemsize for a in extra_args))

    tile_n, vmem_limit = _plan_tiles(
        N, in_f, out_f, x.dtype.itemsize, resident_bytes, tile_n, vmem_budget_bytes)
    grid = (pl.cdiv(N, tile_n),)

    in_specs = [pl.BlockSpec((tile_n, in_f), lambda i: (i, 0))]
    args = [x]
    for w, b in zip(weights, biases2):
        # Grid-invariant blocks: DMA'd once, resident in VMEM across row tiles.
        in_specs.append(pl.BlockSpec(w.shape, lambda i: (0, 0)))
        in_specs.append(pl.BlockSpec(b.shape, lambda i: (0, 0)))
        args += [w, b]
    in_specs += extra_specs
    args += extra_args

    kernel = _make_kernel(nlayers, islast, negative_slope, skip_mode,
                          slice_start, out_f, matmul_dtype)

    return pl.pallas_call(
        kernel,
        out_shape=jax.ShapeDtypeStruct((N, out_f), x.dtype),
        grid=grid,
        in_specs=in_specs,
        out_specs=pl.BlockSpec((tile_n, out_f), lambda i: (i, 0)),
        compiler_params=pltpu.CompilerParams(
            dimension_semantics=("parallel",),
            vmem_limit_bytes=vmem_limit),
    )(*args)


# --------------------------------------------------------------------------- #
# Pure-JAX reference (mirrors the PyTorch forward)
# --------------------------------------------------------------------------- #
def _reference(x, weights, biases, *, skipindices, n_params, n_vars,
               isfirst, islast, noskipping, negative_slope=_NEG_SLOPE):
    N, in_f = x.shape
    out_f = weights[-1].shape[1]
    if in_f < out_f:
        if isfirst:
            identity = x[:, jnp.asarray(list(skipindices))]
        else:
            identity = x[:, :len(skipindices)]
        identity = jnp.concatenate(
            [identity,
             jnp.zeros((N, out_f - len(skipindices)), dtype=x.dtype)], axis=1)
    elif out_f < in_f:
        if islast and len(skipindices) > n_vars:
            identity = x[:, n_params:n_params + out_f]
        else:
            identity = x[:, :out_f]
    else:
        identity = x
    if noskipping:
        identity = jnp.zeros_like(identity)

    r = x
    nlayers = len(weights)
    for i, (w, b) in enumerate(zip(weights, biases)):
        r = jnp.dot(r, w, precision=jax.lax.Precision.HIGHEST) + b
        if not (islast and i == nlayers - 1):
            r = jnp.maximum(r, negative_slope * r)
    return r + identity


# --------------------------------------------------------------------------- #
# Demo / self-test
# --------------------------------------------------------------------------- #
def _make_params(key, dims):
    nlayers = len(dims) - 1
    keys = jax.random.split(key, 2 * nlayers)
    weights, biases = [], []
    for i in range(nlayers):
        fan_in = dims[i]
        w = jax.random.normal(keys[2 * i], (dims[i], dims[i + 1]),
                              dtype=jnp.float32) * (2.0 / fan_in) ** 0.5
        b = jax.random.normal(keys[2 * i + 1], (dims[i + 1],),
                              dtype=jnp.float32) * 0.01
        weights.append(w)
        biases.append(b)
    return weights, biases


def _run_case(name, key, N, dims, *, skipindices, n_params, n_vars,
              isfirst, islast, noskipping):
    kx, kp = jax.random.split(key)
    x = jax.random.normal(kx, (N, dims[0]), dtype=jnp.float32)
    weights, biases = _make_params(kp, dims)

    cfg = dict(skipindices=skipindices, n_params=n_params, n_vars=n_vars,
               isfirst=isfirst, islast=islast, noskipping=noskipping)
    out = linear_with_skip_connection(x, weights, biases, **cfg)
    out = jax.block_until_ready(out)
    ref = _reference(x, weights, biases, **cfg)

    assert out.shape == (N, dims[-1]), f"{name}: wrong shape {out.shape}"
    max_diff = float(jnp.max(jnp.abs(out - ref)))
    assert jnp.allclose(out, ref, rtol=1e-3, atol=1e-3), (
        f"{name}: mismatch vs reference, max abs diff = {max_diff}")


if __name__ == "__main__":
    root = jax.random.PRNGKey(0)
    k1, k2, k3 = jax.random.split(root, 3)

    # Case 1: expanding layer (in < out) with true index_select gather skip.
    _run_case("gather", k1, N=256, dims=[64, 128, 128],
              skipindices=list(range(0, 32, 2)), n_params=8, n_vars=16,
              isfirst=True, islast=False, noskipping=False)

    # Case 2: contracting last block (out < in), multi-layer, slice skip with
    # a non-zero static start (islast and len(skipindices) > n_vars).
    _run_case("slice", k2, N=256, dims=[128, 128, 64],
              skipindices=list(range(24)), n_params=8, n_vars=16,
              isfirst=False, islast=True, noskipping=False)

    # Case 3: single last layer, in == out -> skip folded into the weight.
    _run_case("fold", k3, N=256, dims=[128, 128],
              skipindices=list(range(8)), n_params=8, n_vars=16,
              isfirst=False, islast=True, noskipping=False)

    print("KERNEL_OK")
</pallas_src>

<mosaic_0001>
module attributes {stable_mosaic.version = 11 : i64} {
  func.func @kernel(%arg0: i32, %arg1: memref<256x64xf32, #tpu.memory_space<vmem>>, %arg2: memref<64x128xf32, #tpu.memory_space<vmem>>, %arg3: memref<1x128xf32, #tpu.memory_space<vmem>>, %arg4: memref<128x128xf32, #tpu.memory_space<vmem>>, %arg5: memref<1x128xf32, #tpu.memory_space<vmem>>, %arg6: memref<64x128xf32, #tpu.memory_space<vmem>>, %arg7: memref<256x128xf32, #tpu.memory_space<vmem>>) attributes {dimension_semantics = [#tpu.dimension_semantics<parallel>], iteration_bounds = array<i64: 1>, scalar_prefetch = 0 : i64, scratch_operands = 0 : i64, tpu.core_type = #tpu.core_type<tc>, window_params = [{transform_indices = @transform_0, window_bounds = array<i64: 256, 64>}, {pipeline_mode = #tpu.pipeline_mode<synchronous>, transform_indices = @transform_1, window_bounds = array<i64: 64, 128>}, {pipeline_mode = #tpu.pipeline_mode<synchronous>, transform_indices = @transform_2, window_bounds = array<i64: 1, 128>}, {pipeline_mode = #tpu.pipeline_mode<synchronous>, transform_indices = @transform_3, window_bounds = array<i64: 128, 128>}, {pipeline_mode = #tpu.pipeline_mode<synchronous>, transform_indices = @transform_4, window_bounds = array<i64: 1, 128>}, {pipeline_mode = #tpu.pipeline_mode<synchronous>, transform_indices = @transform_5, window_bounds = array<i64: 64, 128>}, {transform_indices = @transform_6, window_bounds = array<i64: 256, 128>}]} {
    %c0 = arith.constant 0 : index
    %c0_0 = arith.constant 0 : index
    %0 = vector.load %arg1[%c0, %c0_0] : memref<256x64xf32, #tpu.memory_space<vmem>>, vector<256x64xf32>
    %c0_1 = arith.constant 0 : index
    %c0_2 = arith.constant 0 : index
    %1 = vector.load %arg2[%c0_1, %c0_2] : memref<64x128xf32, #tpu.memory_space<vmem>>, vector<64x128xf32>
    %c0_3 = arith.constant 0 : index
    %c0_4 = arith.constant 0 : index
    %2 = vector.load %arg3[%c0_3, %c0_4] : memref<1x128xf32, #tpu.memory_space<vmem>>, vector<1x128xf32>
    %cst = arith.constant dense<0.000000e+00> : vector<256x128xf32>
    %3 = tpu.matmul %0, %1, %cst {dimension_numbers = #tpu.dot_dimension_numbers<[1], [0], [0], [1], [0, 0, 1, 1], [], []>} : vector<256x64xf32>, vector<64x128xf32>, vector<256x128xf32> -> vector<256x128xf32>
    %4 = vector.broadcast %2 : vector<1x128xf32> to vector<256x128xf32>
    %5 = arith.addf %3, %4 : vector<256x128xf32>
    %cst_5 = arith.constant 0.00999999977 : f32
    %6 = vector.broadcast %cst_5 : f32 to vector<256x128xf32>
    %7 = arith.mulf %6, %5 : vector<256x128xf32>
    %8 = arith.maximumf %5, %7 : vector<256x128xf32>
    %c0_6 = arith.constant 0 : index
    %c0_7 = arith.constant 0 : index
    %9 = vector.load %arg4[%c0_6, %c0_7] : memref<128x128xf32, #tpu.memory_space<vmem>>, vector<128x128xf32>
    %c0_8 = arith.constant 0 : index
    %c0_9 = arith.constant 0 : index
    %10 = vector.load %arg5[%c0_8, %c0_9] : memref<1x128xf32, #tpu.memory_space<vmem>>, vector<1x128xf32>
    %cst_10 = arith.constant dense<0.000000e+00> : vector<256x128xf32>
    %11 = tpu.matmul %8, %9, %cst_10 {dimension_numbers = #tpu.dot_dimension_numbers<[1], [0], [0], [1], [0, 0, 1, 1], [], []>} : vector<256x128xf32>, vector<128x128xf32>, vector<256x128xf32> -> vector<256x128xf32>
    %12 = vector.broadcast %10 : vector<1x128xf32> to vector<256x128xf32>
    %13 = arith.addf %11, %12 : vector<256x128xf32>
    %cst_11 = arith.constant 0.00999999977 : f32
    %14 = vector.broadcast %cst_11 : f32 to vector<256x128xf32>
    %15 = arith.mulf %14, %13 : vector<256x128xf32>
    %16 = arith.maximumf %13, %15 : vector<256x128xf32>
    %c0_12 = arith.constant 0 : index
    %c0_13 = arith.constant 0 : index
    %17 = vector.load %arg6[%c0_12, %c0_13] : memref<64x128xf32, #tpu.memory_space<vmem>>, vector<64x128xf32>
    %cst_14 = arith.constant dense<0.000000e+00> : vector<256x128xf32>
    %18 = tpu.matmul %0, %17, %cst_14 {dimension_numbers = #tpu.dot_dimension_numbers<[1], [0], [0], [1], [0, 0, 1, 1], [], []>} : vector<256x64xf32>, vector<64x128xf32>, vector<256x128xf32> -> vector<256x128xf32>
    %19 = arith.addf %16, %18 : vector<256x128xf32>
    %c0_15 = arith.constant 0 : index
    %c0_16 = arith.constant 0 : index
    %20 = vector.load %arg7[%c0_15, %c0_16] : memref<256x128xf32, #tpu.memory_space<vmem>>, vector<256x128xf32>
    tpu.vector_store %arg7[%c0_15, %c0_16], %19 {strides = array<i32>} : memref<256x128xf32, #tpu.memory_space<vmem>>, vector<256x128xf32>,
    return
  }
  func.func @transform_0(%arg0: i32) -> (i32, i32) {
    %c0_i32 = arith.constant 0 : i32
    %c0_i32_0 = arith.constant 0 : i32
    return %arg0, %c0_i32 : i32, i32
  }
  func.func @transform_1(%arg0: i32) -> (i32, i32) {
    %c0_i32 = arith.constant 0 : i32
    %c0_i32_0 = arith.constant 0 : i32
    %c0_i32_1 = arith.constant 0 : i32
    return %c0_i32, %c0_i32_0 : i32, i32
  }
  func.func @transform_2(%arg0: i32) -> (i32, i32) {
    %c0_i32 = arith.constant 0 : i32
    %c0_i32_0 = arith.constant 0 : i32
    %c0_i32_1 = arith.constant 0 : i32
    return %c0_i32, %c0_i32_0 : i32, i32
  }
  func.func @transform_3(%arg0: i32) -> (i32, i32) {
    %c0_i32 = arith.constant 0 : i32
    %c0_i32_0 = arith.constant 0 : i32
    %c0_i32_1 = arith.constant 0 : i32
    return %c0_i32, %c0_i32_0 : i32, i32
  }
  func.func @transform_4(%arg0: i32) -> (i32, i32) {
    %c0_i32 = arith.constant 0 : i32
    %c0_i32_0 = arith.constant 0 : i32
    %c0_i32_1 = arith.constant 0 : i32
    return %c0_i32, %c0_i32_0 : i32, i32
  }
  func.func @transform_5(%arg0: i32) -> (i32, i32) {
    %c0_i32 = arith.constant 0 : i32
    %c0_i32_0 = arith.constant 0 : i32
    %c0_i32_1 = arith.constant 0 : i32
    return %c0_i32, %c0_i32_0 : i32, i32
  }
  func.func @transform_6(%arg0: i32) -> (i32, i32) {
    %c0_i32 = arith.constant 0 : i32
    %c0_i32_0 = arith.constant 0 : i32
    return %arg0, %c0_i32 : i32, i32
  }
}

</mosaic_0001>

<bundles_post_ra>
// kernel: tpu_custom_call.1
= control target key start
LH: loop header
LB: loop body
LE: loop exit
PB: predicated region body
PF: predicated region fallthrough
CT: control target
= control target key end

     0   :  { %vm71_vm0 = vcmask 523264   ;;  %s2086_s0 = inlined_call_operand.vmem [shape: f32[256,64], index: 0, kind: input, shape index: {}]   ;;  %s2087_s1 = inlined_call_operand.vmem [shape: f32[64,128], index: 1, kind: input, shape index: {}]   ;;  %s2088_s2 = inlined_call_operand.vmem [shape: f32[1,128], index: 2, kind: input, shape index: {}]   ;;  %s2089_s3 = inlined_call_operand.vmem [shape: f32[128,128], index: 3, kind: input, shape index: {}]   ;;  %s2090_s4 = inlined_call_operand.vmem [shape: f32[1,128], index: 4, kind: input, shape index: {}]   ;;  %s2091_s5 = inlined_call_operand.vmem [shape: f32[64,128], index: 5, kind: input, shape index: {}]   ;;  %s2092_s6 = inlined_call_operand.hbm [shape: f32[256,128], index: 6, kind: output, shape index: {}]  }
   0x1   :  { %v63_v0 = vld [vmem:[%s2087_s1 + $0x38] sm:$0xff]  ;;  %v62_v1 = vld [vmem:[%s2087_s1 + $0x30] sm:$0xff]  ;;  %v61_v2 = vld [vmem:[%s2087_s1 + $0x28] sm:$0xff] }
   0x2   :  { %1276 = vmatprep.subr.mxu0 %v63_v0  ;;  %1484 = vmatprep.subr.mxu1 %v63_v0  ;;  %v1575_v3 = vld [vmem:[%s2086_s0] sm:$0xff]  ;;  %v59_v5 = vld [vmem:[%s2087_s1 + $0x18] sm:$0xff]  ;;  %v58_v6 = vld [vmem:[%s2087_s1 + $0x10] sm:$0xff] }
   0x3   :  { %1277 = vmatpush3.msra.mxu0 %v63_v0  ;;  %1492 = vmatpush3.msra.mxu1 %v63_v0  ;;  %v60_v4 = vld [vmem:[%s2087_s1 + $0x20] sm:$0xff]  ;;  %v57_v7 = vld [vmem:[%s2087_s1 + $0x8] sm:$0xff]  ;;  %v1602_v10 = vld [vmem:[%s2086_s0 + $0x10] sm:$0xff] }
   0x4   :  { %1278 = vmatprep.subr.mxu0 %v62_v1  ;;  %1292 = vmatprep.mubr.msk.f32.mxu0 %vm71_vm0, %v1575_v3  ;;  %v56_v8 = vld [vmem:[%s2087_s1] sm:$0xff]  ;;  %v1597_v9 = vld [vmem:[%s2086_s0 + $0x8] sm:$0xff]  ;;  %v472_v13 = vld [vmem:[%s2089_s3 + $0x78] sm:$0xff] }
   0x5   :  { %1279 = vmatpush3.msra.mxu0 %v62_v1  ;;  %1485 = vmatprep.subr.mxu1 %v62_v1  ;;  %v1607_v11 = vld [vmem:[%s2086_s0 + $0x80] sm:$0xff]  ;;  %v1612_v12 = vld [vmem:[%s2086_s0 + $0x88] sm:$0xff]  ;;  %v1622_v14 = vld [vmem:[%s2086_s0 + $0x90] sm:$0xff] }
   0x6   :  { %1280 = vmatprep.subr.mxu0 %v61_v2  ;;  %1493 = vmatpush3.msra.mxu1 %v62_v1  ;;  %v1629_v15 = vld [vmem:[%s2086_s0 + $0x18] sm:$0xff]  ;;  %v471_v16 = vld [vmem:[%s2089_s3 + $0x70] sm:$0xff]  ;;  %v1639_v17 = vld [vmem:[%s2086_s0 + $0x20] sm:$0xff] }
   0x7   :  { %1281 = vmatpush3.msra.mxu0 %v61_v2  ;;  %1486 = vmatprep.subr.mxu1 %v61_v2 }
   0x8   :  { %1282 = vmatprep.subr.mxu0 %v60_v4  ;;  %1494 = vmatpush3.msra.mxu1 %v61_v2 }
   0x9   :  { %1283 = vmatpush3.msra.mxu0 %v60_v4  ;;  %1487 = vmatprep.subr.mxu1 %v60_v4 }
   0xa   :  { %1284 = vmatprep.subr.mxu0 %v59_v5  ;;  %1495 = vmatpush3.msra.mxu1 %v60_v4 }
   0xb   :  { %1285 = vmatpush3.msra.mxu0 %v59_v5  ;;  %1488 = vmatprep.subr.mxu1 %v59_v5 }
   0xc   :  { %1286 = vmatprep.subr.mxu0 %v58_v6  ;;  %1496 = vmatpush3.msra.mxu1 %v59_v5 }
   0xd   :  { %1287 = vmatpush3.msra.mxu0 %v58_v6  ;;  %1489 = vmatprep.subr.mxu1 %v58_v6 }
   0xe   :  { %1288 = vmatprep.subr.mxu0 %v57_v7  ;;  %1497 = vmatpush3.msra.mxu1 %v58_v6 }
   0xf   :  { %1289 = vmatpush3.msra.mxu0 %v57_v7  ;;  %1490 = vmatprep.subr.mxu1 %v57_v7 }
  0x10   :  { %1290 = vmatprep.subr.mxu0 %v56_v8  ;;  %1498 = vmatpush3.msra.mxu1 %v57_v7 }
  0x11   :  { %1291 = vmatpush3.msra.mxu0 %v56_v8  ;;  %1491 = vmatprep.subr.mxu1 %v56_v8 }
  0x12   :  { %1293 = vmatmul.mubr.msk.f32.vlgmr.msra.gmra.mxu0 %vm71_vm0, %v1597_v9  ;;  %1499 = vmatpush3.msra.mxu1 %v56_v8 }
  0x13   :  { %1295 = vmatprep.mubr.msk.f32.mxu0 %vm71_vm0, %v1602_v10  ;;  %1316 = vmatprep.mubr.msk.f32.mxu1 %vm71_vm0, %v1607_v11 }
  0x14   :  { %1317 = vmatmul.mubr.msk.f32.vlgmr.msra.gmra.mxu1 %vm71_vm0, %v1612_v12  ;;  %1340 = vmatprep.subr.mxu1 %v472_v13 }
  0x15   :  { %11 = vsyncpa [#allocation3], 0  ;;  %1319 = vmatprep.mubr.msk.f32.mxu1 %vm71_vm0, %v1622_v14  ;;  %v1648_v18 = vld [vmem:[%s2086_s0 + $0x98] sm:$0xff]  ;;  %1341 = vmatpush3.msra.mxu1 %v472_v13  ;;  %v470_v19 = vld [vmem:[%s2089_s3 + $0x68] sm:$0xff] }
  0x16   :  { %1296 = vmatmul.mubr.msk.f32.gmra.mxu0 %vm71_vm0, %v1629_v15  ;;  %v1658_v20 = vld [vmem:[%s2086_s0 + $0xa0] sm:$0xff]  ;;  %1342 = vmatprep.subr.mxu1 %v471_v16  ;;  %v1665_v21 = vld [vmem:[%s2086_s0 + $0x28] sm:$0xff]  ;;  %v1673_v23 = vld [vmem:[%s2086_s0 + $0x30] sm:$0xff] }
  0x17   :  { %1298 = vmatprep.mubr.msk.f32.mxu0 %vm71_vm0, %v1639_v17  ;;  %1343 = vmatpush3.msra.mxu1 %v471_v16  ;;  %v469_v22 = vld [vmem:[%s2089_s3 + $0x60] sm:$0xff]  ;;  %v776_v24 = vld [vmem:[%s2091_s5 + $0x38] sm:$0xff]  ;;  %v1685_v25 = vld [vmem:[%s2086_s0 + $0xa8] sm:$0xff] }
  0x18   :  { %1320 = vmatmul.mubr.msk.f32.gmra.mxu1 %vm71_vm0, %v1648_v18  ;;  %1344 = vmatprep.subr.mxu1 %v470_v19  ;;  %v1692_v26 = vld [vmem:[%s2086_s0 + $0xb0] sm:$0xff]  ;;  %v1699_v27 = vld [vmem:[%s2086_s0 + $0x38] sm:$0xff]  ;;  %v1707_v29 = vld [vmem:[%s2086_s0 + $0x40] sm:$0xff] }
  0x19   :  { %1322 = vmatprep.mubr.msk.f32.mxu1 %vm71_vm0, %v1658_v20  ;;  %1345 = vmatpush3.msra.mxu1 %v470_v19  ;;  %v468_v28 = vld [vmem:[%s2089_s3 + $0x58] sm:$0xff]  ;;  %v467_v31 = vld [vmem:[%s2089_s3 + $0x50] sm:$0xff]  ;;  %v1726_v32 = vld [vmem:[%s2086_s0 + $0xc0] sm:$0xff] }
  0x1a   :  { %1299 = vmatmul.mubr.msk.f32.gmra.mxu0 %vm71_vm0, %v1665_v21  ;;  %1346 = vmatprep.subr.mxu1 %v469_v22  ;;  %v1716_v30 = vld [vmem:[%s2086_s0 + $0xb8] sm:$0xff]  ;;  %v775_v33 = vld [vmem:[%s2091_s5 + $0x30] sm:$0xff]  ;;  %v1736_v34 = vld [vmem:[%s2086_s0 + $0x48] sm:$0xff] }
  0x1b   :  { %1301 = vmatprep.mubr.msk.f32.mxu0 %vm71_vm0, %v1673_v23  ;;  %1420 = vmatprep.subr.mxu0 %v776_v24  ;;  %v1741_v35 = vld [vmem:[%s2086_s0 + $0x50] sm:$0xff]  ;;  %v1750_v36 = vld [vmem:[%s2086_s0 + $0xc8] sm:$0xff]  ;;  %v1767_v39 = vld [vmem:[%s2086_s0 + $0x58] sm:$0xff] }
  0x1c   :  { %1323 = vmatmul.mubr.msk.f32.gmra.mxu1 %vm71_vm0, %v1685_v25  ;;  %1421 = vmatpush3.msra.mxu0 %v776_v24  ;;  %v466_v37 = vld [vmem:[%s2089_s3 + $0x48] sm:$0xff]  ;;  %v1760_v38 = vld [vmem:[%s2086_s0 + $0xd0] sm:$0xff]  ;;  %v465_v40 = vld [vmem:[%s2089_s3 + $0x40] sm:$0xff] }
  0x1d   :  { %1325 = vmatprep.mubr.msk.f32.mxu1 %vm71_vm0, %v1692_v26  ;;  %1347 = vmatpush3.msra.mxu1 %v469_v22  ;;  %v1775_v41 = vld [vmem:[%s2086_s0 + $0x60] sm:$0xff]  ;;  %v774_v42 = vld [vmem:[%s2091_s5 + $0x28] sm:$0xff]  ;;  %v1787_v43 = vld [vmem:[%s2086_s0 + $0xd8] sm:$0xff] }
  0x1e   :  { %1302 = vmatmul.mubr.msk.f32.gmra.mxu0 %vm71_vm0, %v1699_v27  ;;  %1348 = vmatprep.subr.mxu1 %v468_v28  ;;  %v1794_v44 = vld [vmem:[%s2086_s0 + $0xe0] sm:$0xff]  ;;  %v1801_v45 = vld [vmem:[%s2086_s0 + $0x68] sm:$0xff]  ;;  %v464_v46 = vld [vmem:[%s2089_s3 + $0x38] sm:$0xff] }
  0x1f   :  { %1304 = vmatprep.mubr.msk.f32.mxu0 %vm71_vm0, %v1707_v29  ;;  %1349 = vmatpush3.msra.mxu1 %v468_v28  ;;  %v1809_v47 = vld [vmem:[%s2086_s0 + $0x70] sm:$0xff]  ;;  %v1818_v48 = vld [vmem:[%s2086_s0 + $0xe8] sm:$0xff]  ;;  %v773_v51 = vld [vmem:[%s2091_s5 + $0x20] sm:$0xff] }
  0x20   :  { %1326 = vmatmul.mubr.msk.f32.gmra.mxu1 %vm71_vm0, %v1716_v30  ;;  %1350 = vmatprep.subr.mxu1 %v467_v31  ;;  %v463_v49 = vld [vmem:[%s2089_s3 + $0x30] sm:$0xff]  ;;  %v39_v52 = vld [vmem:[%s2086_s0 + $0x78] sm:$0xff]  ;;  %v462_v53 = vld [vmem:[%s2089_s3 + $0x28] sm:$0xff] }
  0x21   :  { %1328 = vmatprep.mubr.msk.f32.mxu1 %vm71_vm0, %v1726_v32  ;;  %1422 = vmatprep.subr.mxu0 %v775_v33  ;;  %v1828_v50 = vld [vmem:[%s2086_s0 + $0xf0] sm:$0xff]  ;;  %v1848_v54 = vld [vmem:[%s2086_s0 + $0xf8] sm:$0xff]  ;;  %v461_v56 = vld [vmem:[%s2089_s3 + $0x20] sm:$0xff] }
  0x22   :  { %1305 = vmatmul.mubr.msk.f32.gmra.mxu0 %vm71_vm0, %v1736_v34  ;;  %1351 = vmatpush3.msra.mxu1 %v467_v31  ;;  %v772_v55 = vld [vmem:[%s2091_s5 + $0x18] sm:$0xff]  ;;  %v459_v58 = vld [vmem:[%s2089_s3 + $0x10] sm:$0xff]  ;;  %v458_v59 = vld [vmem:[%s2089_s3 + $0x8] sm:$0xff] }
  0x23   :  { %1307 = vmatprep.mubr.msk.f32.mxu0 %vm71_vm0, %v1741_v35  ;;  %1423 = vmatpush3.msra.mxu0 %v775_v33  ;;  %v460_v57 = vld [vmem:[%s2089_s3 + $0x18] sm:$0xff]  ;;  %v771_v60 = vld [vmem:[%s2091_s5 + $0x10] sm:$0xff]  ;;  %v457_v61 = vld [vmem:[%s2089_s3] sm:$0xff] }
  0x24   :  { %1329 = vmatmul.mubr.msk.f32.gmra.mxu1 %vm71_vm0, %v1750_v36  ;;  %1352 = vmatprep.subr.mxu1 %v466_v37  ;;  %v770_v62 = vld [vmem:[%s2091_s5 + $0x8] sm:$0xff]  ;;  %v769_v63 = vld [vmem:[%s2091_s5] sm:$0xff] }
  0x25   :  { %1331 = vmatprep.mubr.msk.f32.mxu1 %vm71_vm0, %v1760_v38  ;;  %1353 = vmatpush3.msra.mxu1 %v466_v37  ;;  %v1946_v0 = vld [vmem:[%s2088_s2] ss:$0 sm:$0xff] }
  0x26   :  { %1308 = vmatmul.mubr.msk.f32.gmra.mxu0 %vm71_vm0, %v1767_v39  ;;  %1354 = vmatprep.subr.mxu1 %v465_v40 }
  0x27   :  { %1310 = vmatprep.mubr.msk.f32.mxu0 %vm71_vm0, %v1775_v41  ;;  %1424 = vmatprep.subr.mxu0 %v774_v42 }
  0x28   :  { %1332 = vmatmul.mubr.msk.f32.gmra.mxu1 %vm71_vm0, %v1787_v43  ;;  %1425 = vmatpush3.msra.mxu0 %v774_v42 }
  0x29   :  { %1334 = vmatprep.mubr.msk.f32.mxu1 %vm71_vm0, %v1794_v44  ;;  %1355 = vmatpush3.msra.mxu1 %v465_v40 }
  0x2a   :  { %1311 = vmatmul.mubr.msk.f32.gmra.mxu0 %vm71_vm0, %v1801_v45  ;;  %1356 = vmatprep.subr.mxu1 %v464_v46 }
  0x2b   :  { %1313 = vmatprep.mubr.msk.f32.mxu0 %vm71_vm0, %v1809_v47  ;;  %1357 = vmatpush3.msra.mxu1 %v464_v46 }
  0x2c   :  { %1335 = vmatmul.mubr.msk.f32.gmra.mxu1 %vm71_vm0, %v1818_v48  ;;  %1358 = vmatprep.subr.mxu1 %v463_v49 }
  0x2d   :  { %1337 = vmatprep.mubr.msk.f32.mxu1 %vm71_vm0, %v1828_v50  ;;  %1426 = vmatprep.subr.mxu0 %v773_v51 }
  0x2e   :  { %1314 = vmatmul.mubr.msk.f32.gmra.mxu0 %vm71_vm0, %v39_v52  ;;  %1359 = vmatpush3.msra.mxu1 %v463_v49 }
  0x2f   :  { %1427 = vmatpush3.msra.mxu0 %v773_v51  ;;  %1360 = vmatprep.subr.mxu1 %v462_v53 }
  0x30   :  { %1338 = vmatmul.mubr.msk.f32.gmra.mxu1 %vm71_vm0, %v1848_v54  ;;  %1428 = vmatprep.subr.mxu0 %v772_v55 }
  0x31   :  { %1361 = vmatpush3.msra.mxu1 %v462_v53  ;;  %1429 = vmatpush3.msra.mxu0 %v772_v55 }
  0x32   :  { %1362 = vmatprep.subr.mxu1 %v461_v56  ;;  %1436 = vmatprep.mubr.msk.f32.mxu0 %vm71_vm0, %v1575_v3 }
  0x33   :  { %1363 = vmatpush3.msra.mxu1 %v461_v56  ;;  %1430 = vmatprep.subr.mxu0 %v771_v60 }
  0x34   :  { %1364 = vmatprep.subr.mxu1 %v460_v57  ;;  %1431 = vmatpush3.msra.mxu0 %v771_v60 }
  0x35   :  { %1365 = vmatpush3.msra.mxu1 %v460_v57  ;;  %1432 = vmatprep.subr.mxu0 %v770_v62 }
  0x36   :  { %1366 = vmatprep.subr.mxu1 %v459_v58  ;;  %1433 = vmatpush3.msra.mxu0 %v770_v62 }
  0x37   :  { %1367 = vmatpush3.msra.mxu1 %v459_v58  ;;  %1434 = vmatprep.subr.mxu0 %v769_v63 }
  0x38   :  { %1368 = vmatprep.subr.mxu1 %v458_v59  ;;  %1435 = vmatpush3.msra.mxu0 %v769_v63 }
  0x39   :  { %1369 = vmatpush3.msra.mxu1 %v458_v59  ;;  %1437 = vmatmul.mubr.msk.f32.vlgmr.msra.gmra.mxu0 %vm71_vm0, %v1597_v9 }
  0x3a   :  { %1370 = vmatprep.subr.mxu1 %v457_v61  ;;  %1439 = vmatprep.mubr.msk.f32.mxu0 %vm71_vm0, %v1602_v10 }
  0x3b   :  { %1371 = vmatpush3.msra.mxu1 %v457_v61 }
  0x3d   :  { %1440 = vmatmul.mubr.msk.f32.gmra.mxu0 %vm71_vm0, %v1629_v15 }
  0x3e   :  { %1442 = vmatprep.mubr.msk.f32.mxu0 %vm71_vm0, %v1639_v17 }
  0x41   :  { %1443 = vmatmul.mubr.msk.f32.gmra.mxu0 %vm71_vm0, %v1665_v21 }
  0x42   :  { %1445 = vmatprep.mubr.msk.f32.mxu0 %vm71_vm0, %v1673_v23 }
  0x45   :  { %1446 = vmatmul.mubr.msk.f32.gmra.mxu0 %vm71_vm0, %v1699_v27 }
  0x46   :  { %1448 = vmatprep.mubr.msk.f32.mxu0 %vm71_vm0, %v1707_v29 }
  0x49   :  { %1449 = vmatmul.mubr.msk.f32.gmra.mxu0 %vm71_vm0, %v1736_v34 }
  0x4a   :  { %1451 = vmatprep.mubr.msk.f32.mxu0 %vm71_vm0, %v1741_v35 }
  0x4d   :  { %1452 = vmatmul.mubr.msk.f32.gmra.mxu0 %vm71_vm0, %v1767_v39 }
  0x4e   :  { %1454 = vmatprep.mubr.msk.f32.mxu0 %vm71_vm0, %v1775_v41 }
  0x51   :  { %1455 = vmatmul.mubr.msk.f32.gmra.mxu0 %vm71_vm0, %v1801_v45 }
  0x52   :  { %1457 = vmatprep.mubr.msk.f32.mxu0 %vm71_vm0, %v1809_v47 }
  0x55   :  { %1458 = vmatmul.mubr.msk.f32.gmra.mxu0 %vm71_vm0, %v39_v52 }
  0x56   :  { %1460 = vmatprep.mubr.msk.f32.mxu0 %vm71_vm0, %v1607_v11 }
  0x59   :  { %1461 = vmatmul.mubr.msk.f32.gmra.mxu0 %vm71_vm0, %v1612_v12 }
  0x5a   :  { %1463 = vmatprep.mubr.msk.f32.mxu0 %vm71_vm0, %v1622_v14 }
  0x5d   :  { %1464 = vmatmul.mubr.msk.f32.gmra.mxu0 %vm71_vm0, %v1648_v18 }
  0x5e   :  { %1466 = vmatprep.mubr.msk.f32.mxu0 %vm71_vm0, %v1658_v20 }
  0x61   :  { %1467 = vmatmul.mubr.msk.f32.gmra.mxu0 %vm71_vm0, %v1685_v25 }
  0x62   :  { %1469 = vmatprep.mubr.msk.f32.mxu0 %vm71_vm0, %v1692_v26 }
  0x65   :  { %1470 = vmatmul.mubr.msk.f32.gmra.mxu0 %vm71_vm0, %v1716_v30 }
  0x66   :  { %1472 = vmatprep.mubr.msk.f32.mxu0 %vm71_vm0, %v1726_v32 }
  0x69   :  { %1473 = vmatmul.mubr.msk.f32.gmra.mxu0 %vm71_vm0, %v1750_v36 }
  0x6a   :  { %1475 = vmatprep.mubr.msk.f32.mxu0 %vm71_vm0, %v1760_v38 }
  0x6d   :  { %1476 = vmatmul.mubr.msk.f32.gmra.mxu0 %vm71_vm0, %v1787_v43 }
  0x6e   :  { %1478 = vmatprep.mubr.msk.f32.mxu0 %vm71_vm0, %v1794_v44 }
  0x71   :  { %1479 = vmatmul.mubr.msk.f32.gmra.mxu0 %vm71_vm0, %v1818_v48 }
  0x72   :  { %1481 = vmatprep.mubr.msk.f32.mxu0 %vm71_vm0, %v1828_v50 }
  0x75   :  { %1482 = vmatmul.mubr.msk.f32.gmra.mxu0 %vm71_vm0, %v1848_v54 }
  0xd2   :  { %v1294_v1 = vpop.f32.mrf.mxu0 }
  0xd3   :  { %v240_v2 = vadd.f32 %v1294_v1, %v1946_v0 }
  0xd4   :  { %v234_v3 = vpop.f32.mrf.mxu0  ;;  %v1949_v4 = vpop.f32.mrf.mxu1 }
  0xd5   :  { %v235_v5 = vadd.f32 %v1946_v0, %v234_v3  ;;  %v394_v6 = vmul.f32 0.01, %v240_v2 }
  0xd6   :  { %v1297_v7 = vpop.f32.mrf.mxu0  ;;  %v1952_v8 = vpop.f32.mrf.mxu1 }
  0xd7   :  { %v393_v9 = vmul.f32 0.01, %v235_v5  ;;  %v250_v10 = vadd.f32 %v1297_v7, %v1946_v0  ;;  %v426_v15 = vmax.f32 %v240_v2, %v394_v6  ;;  %v315_v3 = vadd.f32 %v1946_v0, %v1952_v8 }
  0xd8   :  { %v244_v11 = vpop.f32.mrf.mxu0  ;;  %v1955_v12 = vpop.f32.mrf.mxu1 }
  0xd9   :  { %v425_v13 = vmax.f32 %v235_v5, %v393_v9  ;;  %v245_v14 = vadd.f32 %v1946_v0, %v244_v11  ;;  %v396_v16 = vmul.f32 0.01, %v250_v10 }
  0xda   :  { %v1300_v17 = vpop.f32.mrf.mxu0  ;;  %v1958_v18 = vpop.f32.mrf.mxu1 }
  0xdb   :  { %v395_v19 = vmul.f32 0.01, %v245_v14  ;;  %v260_v20 = vadd.f32 %v1300_v17, %v1946_v0  ;;  %1372 = vmatprep.mubr.f32.mxu1 %v425_v13  ;;  %v428_v25 = vmax.f32 %v250_v10, %v396_v16  ;;  %v320_v13 = vadd.f32 %v1949_v4, %v1946_v0 }
  0xdc   :  { %v254_v21 = vpop.f32.mrf.mxu0  ;;  %1373 = vmatmul.mubr.f32.vlgmr.msra.gmra.mxu1 %v426_v15  ;;  %v1961_v22 = vpop.f32.mrf.mxu1  ;;  %v409_v15 = vmul.f32 0.01, %v315_v3  ;;  %v325_v16 = vadd.f32 %v1946_v0, %v1958_v18 }
  0xdd   :  { %v427_v23 = vmax.f32 %v245_v14, %v395_v19  ;;  %v255_v24 = vadd.f32 %v1946_v0, %v254_v21  ;;  %v398_v26 = vmul.f32 0.01, %v260_v20  ;;  %v330_v21 = vadd.f32 %v1955_v12, %v1946_v0 }
  0xde   :  { %v1303_v27 = vpop.f32.mrf.mxu0  ;;  %v1965_v31 = vpop.f32.mrf.mxu1  ;;  %v340_v18 = vadd.f32 %v1961_v22, %v1946_v0 }
  0xdf   :  { %v397_v28 = vmul.f32 0.01, %v255_v24  ;;  %v270_v29 = vadd.f32 %v1303_v27, %v1946_v0  ;;  %1375 = vmatprep.mubr.f32.mxu1 %v427_v23  ;;  %v430_v34 = vmax.f32 %v260_v20, %v398_v26  ;;  %v410_v20 = vmul.f32 0.01, %v320_v13 }
  0xe0   :  { %v264_v30 = vpop.f32.mrf.mxu0  ;;  %1376 = vmatmul.mubr.f32.gmra.mxu1 %v428_v25  ;;  %v1969_v40 = vpop.f32.mrf.mxu1  ;;  %v441_v23 = vmax.f32 %v315_v3, %v409_v15  ;;  %v335_v4 = vadd.f32 %v1946_v0, %v1965_v31  ;;  %v412_v27 = vmul.f32 0.01, %v330_v21 }
  0xe1   :  { %v429_v32 = vmax.f32 %v255_v24, %v397_v28  ;;  %v265_v33 = vadd.f32 %v1946_v0, %v264_v30  ;;  %v400_v35 = vmul.f32 0.01, %v270_v29  ;;  %v411_v24 = vmul.f32 0.01, %v325_v16 }
  0xe2   :  { %v1306_v36 = vpop.f32.mrf.mxu0  ;;  %v344_v49 = vpop.f32.mrf.mxu1  ;;  %v442_v26 = vmax.f32 %v320_v13, %v410_v20  ;;  %v350_v31 = vadd.f32 %v1969_v40, %v1946_v0 }
  0xe3   :  { %v399_v37 = vmul.f32 0.01, %v265_v33  ;;  %v280_v38 = vadd.f32 %v1306_v36, %v1946_v0  ;;  %1378 = vmatprep.mubr.f32.mxu1 %v429_v32  ;;  %v432_v43 = vmax.f32 %v270_v29, %v400_v35  ;;  %v443_v28 = vmax.f32 %v325_v16, %v411_v24 }
  0xe4   :  { %v274_v39 = vpop.f32.mrf.mxu0  ;;  %1379 = vmatmul.mubr.f32.gmra.mxu1 %v430_v34  ;;  %v1330_v58 = vpop.f32.mrf.mxu1  ;;  %v413_v29 = vmul.f32 0.01, %v335_v4  ;;  %v345_v30 = vadd.f32 %v1946_v0, %v344_v49  ;;  %v444_v32 = vmax.f32 %v330_v21, %v412_v27 }
  0xe5   :  { %v431_v41 = vmax.f32 %v265_v33, %v399_v37  ;;  %v275_v42 = vadd.f32 %v1946_v0, %v274_v39  ;;  %v402_v44 = vmul.f32 0.01, %v280_v38  ;;  %v414_v33 = vmul.f32 0.01, %v340_v18 }
  0xe6   :  { %v1309_v45 = vpop.f32.mrf.mxu0  ;;  %v354_v6 = vpop.f32.mrf.mxu1  ;;  %v445_v34 = vmax.f32 %v335_v4, %v413_v29  ;;  %v415_v35 = vmul.f32 0.01, %v345_v30  ;;  %v360_v39 = vadd.f32 %v1330_v58, %v1946_v0 }
  0xe7   :  { %v401_v46 = vmul.f32 0.01, %v275_v42  ;;  %v290_v47 = vadd.f32 %v1309_v45, %v1946_v0  ;;  %1381 = vmatprep.mubr.f32.mxu1 %v431_v41  ;;  %v434_v52 = vmax.f32 %v280_v38, %v402_v44  ;;  %v355_v36 = vadd.f32 %v1946_v0, %v354_v6 }
  0xe8   :  { %v284_v48 = vpop.f32.mrf.mxu0  ;;  %1382 = vmatmul.mubr.f32.gmra.mxu1 %v432_v43  ;;  %v1333_v17 = vpop.f32.mrf.mxu1  ;;  %v446_v22 = vmax.f32 %v340_v18, %v414_v33  ;;  %v416_v38 = vmul.f32 0.01, %v350_v31  ;;  %v447_v41 = vmax.f32 %v345_v30, %v415_v35  ;;  %v418_v40 = vmul.f32 0.01, %v360_v39 }
  0xe9   :  { %v433_v50 = vmax.f32 %v275_v42, %v401_v46  ;;  %v285_v51 = vadd.f32 %v1946_v0, %v284_v48  ;;  %v404_v53 = vmul.f32 0.01, %v290_v47  ;;  %v417_v42 = vmul.f32 0.01, %v355_v36 }
  0xea   :  { %v1312_v54 = vpop.f32.mrf.mxu0  ;;  %v364_v25 = vpop.f32.mrf.mxu1  ;;  %v448_v45 = vmax.f32 %v350_v31, %v416_v38  ;;  %v370_v46 = vadd.f32 %v1333_v17, %v1946_v0 }
  0xeb   :  { %v403_v55 = vmul.f32 0.01, %v285_v51  ;;  %v300_v56 = vadd.f32 %v1312_v54, %v1946_v0  ;;  %1384 = vmatprep.mubr.f32.mxu1 %v433_v50  ;;  %v436_v61 = vmax.f32 %v290_v47, %v404_v53  ;;  %v365_v43 = vadd.f32 %v1946_v0, %v364_v25 }
  0xec   :  { %v294_v57 = vpop.f32.mrf.mxu0  ;;  %1385 = vmatmul.mubr.f32.gmra.mxu1 %v434_v52  ;;  %v1336_v12 = vpop.f32.mrf.mxu1  ;;  %v449_v47 = vmax.f32 %v355_v36, %v417_v42  ;;  %v420_v52 = vmul.f32 0.01, %v370_v46 }
  0xed   :  { %v435_v59 = vmax.f32 %v285_v51, %v403_v55  ;;  %v295_v60 = vadd.f32 %v1946_v0, %v294_v57  ;;  %v406_v62 = vmul.f32 0.01, %v300_v56  ;;  %v419_v48 = vmul.f32 0.01, %v365_v43 }
  0xee   :  { %v1315_v63 = vpop.f32.mrf.mxu0  ;;  %v374_v37 = vpop.f32.mrf.mxu1  ;;  %v450_v51 = vmax.f32 %v360_v39, %v418_v40  ;;  %v380_v53 = vadd.f32 %v1336_v12, %v1946_v0  ;;  %v452_v57 = vmax.f32 %v370_v46, %v420_v52 }
  0xef   :  { %v405_v1 = vmul.f32 0.01, %v295_v60  ;;  %v310_v2 = vadd.f32 %v1315_v63, %v1946_v0  ;;  %1387 = vmatprep.mubr.f32.mxu1 %v435_v59  ;;  %v438_v10 = vmax.f32 %v300_v56, %v406_v62  ;;  %v375_v49 = vadd.f32 %v1946_v0, %v374_v37 }
  0xf0   :  { %v304_v5 = vpop.f32.mrf.mxu0  ;;  %1388 = vmatmul.mubr.f32.gmra.mxu1 %v436_v61  ;;  %v1339_v44 = vpop.f32.mrf.mxu1  ;;  %v451_v54 = vmax.f32 %v365_v43, %v419_v48  ;;  %v422_v58 = vmul.f32 0.01, %v380_v53 }
  0xf1   :  { %v437_v7 = vmax.f32 %v295_v60, %v405_v1  ;;  %v305_v9 = vadd.f32 %v1946_v0, %v304_v5  ;;  %v408_v11 = vmul.f32 0.01, %v310_v2  ;;  %v421_v55 = vmul.f32 0.01, %v375_v49 }
  0xf2   :  { %v384_v50 = vpop.f32.mrf.mxu1  ;;  %v390_v59 = vadd.f32 %v1339_v44, %v1946_v0  ;;  %v454_v62 = vmax.f32 %v380_v53, %v422_v58 }
  0xf3   :  { %v407_v14 = vmul.f32 0.01, %v305_v9  ;;  %1390 = vmatprep.mubr.f32.mxu1 %v437_v7  ;;  %v440_v19 = vmax.f32 %v310_v2, %v408_v11  ;;  %v385_v56 = vadd.f32 %v1946_v0, %v384_v50  ;;  %v453_v60 = vmax.f32 %v375_v49, %v421_v55 }
  0xf4   :  { %1391 = vmatmul.mubr.f32.gmra.mxu1 %v438_v10  ;;  %v424_v63 = vmul.f32 0.01, %v390_v59 }
  0xf5   :  { %v439_v8 = vmax.f32 %v305_v9, %v407_v14  ;;  %v423_v61 = vmul.f32 0.01, %v385_v56 }
  0xf6   :  { %v456_v2 = vmax.f32 %v390_v59, %v424_v63 }
  0xf7   :  { %1393 = vmatprep.mubr.f32.mxu1 %v439_v8  ;;  %v455_v1 = vmax.f32 %v385_v56, %v423_v61 }
  0xf8   :  { %1394 = vmatmul.mubr.f32.gmra.mxu1 %v440_v19  ;;  %v2018_v19 = vld [vmem:[%s2090_s4] ss:$0 sm:$0xff]  ;;  %s1525_s4 = smov [#allocation2]  }
  0xf9   :  { %1396 = vmatprep.mubr.f32.mxu1 %v441_v23  ;;  %v1438_v3 = vpop.f32.mrf.mxu0  ;;  %s1071_s24 = sshll.u32 %s1525_s4, 4  ;;  %s1072_s24 = int_to_ptr.vmem [resolvable:$true] %s1071_s24 }
  0xfa   :  { %s1503_s25 = scalar_lea.vmem %s1072_s24, 4096  ;;  %p1508_p1 = scmp.lt.s32.totalorder %s1072_s24, %s1072_s24 }
  0xfb   :  { %v843_v5 = vpop.f32.mrf.mxu0  ;;  %p1504_p0 = scmp.ne.s32.totalorder %s1072_s24, %s1503_s25  ;;  %p1509_p2 = scmp.lt.s32.totalorder %s1503_s25, %s1503_s25 }
  0xfc   :  { %1397 = vmatmul.mubr.f32.gmra.mxu1 %v442_v26 }
  0xfd   :  { %1399 = vmatprep.mubr.f32.mxu1 %v443_v28  ;;  %v1441_v6 = vpop.f32.mrf.mxu0  ;;  %p1510_p3 = por %p1509_p2, %p1508_p1 }
  0xff   :  { %v853_v7 = vpop.f32.mrf.mxu0  ;;  %p1511_p4 = pnand %p1510_p3, %p1504_p0 }
 0x100   :  { %1400 = vmatmul.mubr.f32.gmra.mxu1 %v444_v32 }
 0x101   :  { %1402 = vmatprep.mubr.f32.mxu1 %v445_v34  ;;  %v1444_v9 = vpop.f32.mrf.mxu0 }
 0x103   :  { %v863_v10 = vpop.f32.mrf.mxu0 }
 0x104   :  { %1403 = vmatmul.mubr.f32.gmra.mxu1 %v446_v22 }
 0x105   :  { %1405 = vmatprep.mubr.f32.mxu1 %v447_v41  ;;  %v1447_v11 = vpop.f32.mrf.mxu0 }
 0x107   :  { %v2001_v13 = vpop.f32.mrf.mxu0 }
 0x108   :  { %1406 = vmatmul.mubr.f32.gmra.mxu1 %v448_v45 }
 0x109   :  { %1408 = vmatprep.mubr.f32.mxu1 %v449_v47  ;;  %v2003_v0 = vpop.f32.mrf.mxu0 }
 0x10b   :  { %v2005_v14 = vpop.f32.mrf.mxu0 }
 0x10c   :  { %1409 = vmatmul.mubr.f32.gmra.mxu1 %v450_v51 }
 0x10d   :  { %1411 = vmatprep.mubr.f32.mxu1 %v451_v54  ;;  %v2007_v15 = vpop.f32.mrf.mxu0 }
 0x10f   :  { %v2009_v16 = vpop.f32.mrf.mxu0 }
 0x110   :  { %1412 = vmatmul.mubr.f32.gmra.mxu1 %v452_v57 }
 0x111   :  { %1414 = vmatprep.mubr.f32.mxu1 %v453_v60  ;;  %v2011_v17 = vpop.f32.mrf.mxu0 }
 0x113   :  { %v2013_v8 = vpop.f32.mrf.mxu0 }
 0x114   :  { %1415 = vmatmul.mubr.f32.gmra.mxu1 %v454_v62 }
 0x115   :  { %1417 = vmatprep.mubr.f32.mxu1 %v455_v1  ;;  %v2020_v21 = vpop.f32.mrf.mxu0 }
 0x117   :  { %v2024_v27 = vpop.f32.mrf.mxu0 }
 0x118   :  { %1418 = vmatmul.mubr.f32.gmra.mxu1 %v456_v2 }
 0x119   :  { %v2028_v35 = vpop.f32.mrf.mxu0 }
 0x11b   :  { %v2032_v40 = vpop.f32.mrf.mxu0 }
 0x11d   :  { %v2036_v56 = vpop.f32.mrf.mxu0 }
 0x19c   :  { %v1374_v20 = vpop.f32.mrf.mxu1 }
 0x19d   :  { %v552_v23 = vadd.f32 %v1374_v20, %v2018_v19 }
 0x19e   :  { %v546_v24 = vpop.f32.mrf.mxu1 }
 0x19f   :  { %v706_v4 = vmul.f32 0.01, %v552_v23  ;;  %v547_v25 = vadd.f32 %v2018_v19, %v546_v24 }
 0x1a0   :  { %v1377_v26 = vpop.f32.mrf.mxu1 }
 0x1a1   :  { %v705_v18 = vmul.f32 0.01, %v547_v25  ;;  %v562_v28 = vadd.f32 %v1377_v26, %v2018_v19  ;;  %v738_v29 = vmax.f32 %v552_v23, %v706_v4 }
 0x1a2   :  { %v556_v30 = vpop.f32.mrf.mxu1 }
 0x1a3   :  { %v708_v12 = vmul.f32 0.01, %v562_v28  ;;  %v1003_v32 = vadd.f32 %v1438_v3, %v738_v29  ;;  %v557_v33 = vadd.f32 %v2018_v19, %v556_v30  ;;  %v737_v31 = vmax.f32 %v547_v25, %v705_v18 }
 0x1a4   :  { %v1380_v34 = vpop.f32.mrf.mxu1 }
 0x1a5   :  { %1035 = vst [vmem:[#allocation2 + $0x8] sm:$0xff] %v1003_v32  ;;  %v707_v36 = vmul.f32 0.01, %v557_v33  ;;  %v1002_v37 = vadd.f32 %v843_v5, %v737_v31  ;;  %v572_v22 = vadd.f32 %v1380_v34, %v2018_v19  ;;  %v740_v38 = vmax.f32 %v562_v28, %v708_v12  ;;  %v2040_v5 = vpop.f32.mrf.mxu0 }
 0x1a6   :  { %v566_v39 = vpop.f32.mrf.mxu1 }
 0x1a7   :  { %1034 = vst [vmem:[#allocation2] sm:$0xff] %v1002_v37  ;;  %v710_v41 = vmul.f32 0.01, %v572_v22  ;;  %v1005_v42 = vadd.f32 %v1441_v6, %v740_v38  ;;  %v567_v43 = vadd.f32 %v2018_v19, %v566_v39  ;;  %v739_v44 = vmax.f32 %v557_v33, %v707_v36  ;;  %v2046_v26 = vpop.f32.mrf.mxu0 }
 0x1a8   :  { %v1383_v45 = vpop.f32.mrf.mxu1 }
 0x1a9   :  { %1037 = vst [vmem:[#allocation2 + $0x18] sm:$0xff] %v1005_v42  ;;  %v709_v46 = vmul.f32 0.01, %v567_v43  ;;  %v1004_v47 = vadd.f32 %v853_v7, %v739_v44  ;;  %v582_v48 = vadd.f32 %v1383_v45, %v2018_v19  ;;  %v742_v49 = vmax.f32 %v572_v22, %v710_v41  ;;  %v2052_v34 = vpop.f32.mrf.mxu0 }
 0x1aa   :  { %v576_v50 = vpop.f32.mrf.mxu1 }
 0x1ab   :  { %1036 = vst [vmem:[#allocation2 + $0x10] sm:$0xff] %v1004_v47  ;;  %v712_v51 = vmul.f32 0.01, %v582_v48  ;;  %v1007_v52 = vadd.f32 %v1444_v9, %v742_v49  ;;  %v577_v53 = vadd.f32 %v2018_v19, %v576_v50  ;;  %v741_v54 = vmax.f32 %v567_v43, %v709_v46  ;;  %v1471_v44 = vpop.f32.mrf.mxu0 }
 0x1ac   :  { %v1386_v55 = vpop.f32.mrf.mxu1 }
 0x1ad   :  { %1039 = vst [vmem:[#allocation2 + $0x28] sm:$0xff] %v1007_v52  ;;  %v711_v57 = vmul.f32 0.01, %v577_v53  ;;  %v1006_v58 = vadd.f32 %v863_v10, %v741_v54  ;;  %v592_v59 = vadd.f32 %v1386_v55, %v2018_v19  ;;  %v744_v60 = vmax.f32 %v582_v48, %v712_v51 }
 0x1ae   :  { %v586_v61 = vpop.f32.mrf.mxu1 }
 0x1af   :  { %1038 = vst [vmem:[#allocation2 + $0x20] sm:$0xff] %v1006_v58  ;;  %v714_v62 = vmul.f32 0.01, %v592_v59  ;;  %v1009_v63 = vadd.f32 %v1447_v11, %v744_v60  ;;  %v587_v1 = vadd.f32 %v2018_v19, %v586_v61  ;;  %v743_v2 = vmax.f32 %v577_v53, %v711_v57  ;;  %v953_v53 = vpop.f32.mrf.mxu0 }
 0x1b0   :  { %v1389_v3 = vpop.f32.mrf.mxu1 }
 0x1b1   :  { %1041 = vst [vmem:[#allocation2 + $0x38] sm:$0xff] %v1009_v63  ;;  %v713_v6 = vmul.f32 0.01, %v587_v1  ;;  %v1008_v7 = vadd.f32 %v2001_v13, %v743_v2  ;;  %v602_v9 = vadd.f32 %v1389_v3, %v2018_v19  ;;  %v746_v10 = vmax.f32 %v592_v59, %v714_v62  ;;  %v1474_v63 = vpop.f32.mrf.mxu0 }
 0x1b2   :  { %v596_v20 = vpop.f32.mrf.mxu1 }
 0x1b3   :  { %1040 = vst [vmem:[#allocation2 + $0x30] sm:$0xff] %v1008_v7  ;;  %v716_v23 = vmul.f32 0.01, %v602_v9  ;;  %v1011_v24 = vadd.f32 %v2003_v0, %v746_v10  ;;  %v597_v11 = vadd.f32 %v2018_v19, %v596_v20  ;;  %v745_v4 = vmax.f32 %v587_v1, %v713_v6 }
 0x1b4   :  { %v1392_v25 = vpop.f32.mrf.mxu1 }
 0x1b5   :  { %1043 = vst [vmem:[#allocation2 + $0x48] sm:$0xff] %v1011_v24  ;;  %v715_v18 = vmul.f32 0.01, %v597_v11  ;;  %v1010_v28 = vadd.f32 %v2005_v14, %v745_v4  ;;  %v612_v13 = vadd.f32 %v1392_v25, %v2018_v19  ;;  %v748_v29 = vmax.f32 %v602_v9, %v716_v23  ;;  %v963_v23 = vpop.f32.mrf.mxu0 }
 0x1b6   :  { %v606_v30 = vpop.f32.mrf.mxu1 }
 0x1b7   :  { %1042 = vst [vmem:[#allocation2 + $0x40] sm:$0xff] %v1010_v28  ;;  %v718_v12 = vmul.f32 0.01, %v612_v13  ;;  %v1013_v32 = vadd.f32 %v2007_v15, %v748_v29  ;;  %v607_v0 = vadd.f32 %v2018_v19, %v606_v30  ;;  %v747_v33 = vmax.f32 %v597_v11, %v715_v18  ;;  %v1477_v30 = vpop.f32.mrf.mxu0 }
 0x1b8   :  { %v1395_v31 = vpop.f32.mrf.mxu1 }
 0x1b9   :  { %1045 = vst [vmem:[#allocation2 + $0x58] sm:$0xff] %v1013_v32  ;;  %v717_v36 = vmul.f32 0.01, %v607_v0  ;;  %v1012_v37 = vadd.f32 %v2009_v16, %v747_v33  ;;  %v622_v14 = vadd.f32 %v1395_v31, %v2018_v19  ;;  %v750_v22 = vmax.f32 %v612_v13, %v718_v12 }
 0x1ba   :  { %v616_v38 = vpop.f32.mrf.mxu1 }
 0x1bb   :  { %1044 = vst [vmem:[#allocation2 + $0x50] sm:$0xff] %v1012_v37  ;;  %v720_v39 = vmul.f32 0.01, %v622_v14  ;;  %v1015_v41 = vadd.f32 %v2011_v17, %v750_v22  ;;  %v617_v15 = vadd.f32 %v2018_v19, %v616_v38  ;;  %v749_v42 = vmax.f32 %v607_v0, %v717_v36  ;;  %v973_v22 = vpop.f32.mrf.mxu0 }
 0x1bc   :  { %v1398_v43 = vpop.f32.mrf.mxu1 }
 0x1bd   :  { %1047 = vst [vmem:[#allocation2 + $0x68] sm:$0xff] %v1015_v41  ;;  %v719_v45 = vmul.f32 0.01, %v617_v15  ;;  %v1014_v46 = vadd.f32 %v2013_v8, %v749_v42  ;;  %v632_v47 = vadd.f32 %v1398_v43, %v2018_v19  ;;  %v752_v16 = vmax.f32 %v622_v14, %v720_v39 }
 0x1be   :  { %v626_v48 = vpop.f32.mrf.mxu1 }
 0x1bf   :  { %1046 = vst [vmem:[#allocation2 + $0x60] sm:$0xff] %v1014_v46  ;;  %v722_v49 = vmul.f32 0.01, %v632_v47  ;;  %v1017_v50 = vadd.f32 %v2020_v21, %v752_v16  ;;  %v627_v51 = vadd.f32 %v2018_v19, %v626_v48  ;;  %v751_v17 = vmax.f32 %v617_v15, %v719_v45 }
 0x1c0   :  { %v1401_v52 = vpop.f32.mrf.mxu1 }
 0x1c1   :  { %1049 = vst [vmem:[#allocation2 + $0x78] sm:$0xff] %v1017_v50  ;;  %v721_v54 = vmul.f32 0.01, %v627_v51  ;;  %v1016_v55 = vadd.f32 %v2024_v27, %v751_v17  ;;  %v642_v57 = vadd.f32 %v1401_v52, %v2018_v19  ;;  %v754_v8 = vmax.f32 %v632_v47, %v722_v49 }
 0x1c2   :  { %v636_v58 = vpop.f32.mrf.mxu1 }
 0x1c3   :  { %1048 = vst [vmem:[#allocation2 + $0x70] sm:$0xff] %v1016_v55  ;;  %v724_v59 = vmul.f32 0.01, %v642_v57  ;;  %v1019_v60 = vadd.f32 %v2028_v35, %v754_v8  ;;  %v637_v61 = vadd.f32 %v2018_v19, %v636_v58  ;;  %v753_v21 = vmax.f32 %v627_v51, %v721_v54 }
 0x1c4   :  { %v1404_v62 = vpop.f32.mrf.mxu1 }
 0x1c5   :  { %1051 = vst [vmem:[#allocation2 + $0x88] sm:$0xff] %v1019_v60  ;;  %v723_v1 = vmul.f32 0.01, %v637_v61  ;;  %v1018_v2 = vadd.f32 %v2032_v40, %v753_v21  ;;  %v652_v3 = vadd.f32 %v1404_v62, %v2018_v19  ;;  %v756_v27 = vmax.f32 %v642_v57, %v724_v59 }
 0x1c6   :  { %v646_v6 = vpop.f32.mrf.mxu1 }
 0x1c7   :  { %1050 = vst [vmem:[#allocation2 + $0x80] sm:$0xff] %v1018_v2  ;;  %v726_v7 = vmul.f32 0.01, %v652_v3  ;;  %v1021_v9 = vadd.f32 %v2036_v56, %v756_v27  ;;  %v647_v10 = vadd.f32 %v2018_v19, %v646_v6  ;;  %v755_v35 = vmax.f32 %v637_v61, %v723_v1 }
 0x1c8   :  { %v1407_v20 = vpop.f32.mrf.mxu1 }
 0x1c9   :  { %1053 = vst [vmem:[#allocation2 + $0x98] sm:$0xff] %v1021_v9  ;;  %v725_v24 = vmul.f32 0.01, %v647_v10  ;;  %v1020_v11 = vadd.f32 %v2040_v5, %v755_v35  ;;  %v662_v4 = vadd.f32 %v1407_v20, %v2018_v19  ;;  %v758_v40 = vmax.f32 %v652_v3, %v726_v7 }
 0x1ca   :  { %v656_v25 = vpop.f32.mrf.mxu1 }
 0x1cb   :  { %1052 = vst [vmem:[#allocation2 + $0x90] sm:$0xff] %v1020_v11  ;;  %v728_v18 = vmul.f32 0.01, %v662_v4  ;;  %v1023_v28 = vadd.f32 %v2046_v26, %v758_v40  ;;  %v657_v13 = vadd.f32 %v2018_v19, %v656_v25  ;;  %v757_v56 = vmax.f32 %v647_v10, %v725_v24 }
 0x1cc   :  { %v1410_v29 = vpop.f32.mrf.mxu1 }
 0x1cd   :  { %1055 = vst [vmem:[#allocation2 + $0xa8] sm:$0xff] %v1023_v28  ;;  %v727_v12 = vmul.f32 0.01, %v657_v13  ;;  %v1022_v32 = vadd.f32 %v2052_v34, %v757_v56  ;;  %v672_v0 = vadd.f32 %v1410_v29, %v2018_v19  ;;  %v760_v5 = vmax.f32 %v662_v4, %v728_v18 }
 0x1ce   :  { %v666_v33 = vpop.f32.mrf.mxu1 }
 0x1cf   :  { %1054 = vst [vmem:[#allocation2 + $0xa0] sm:$0xff] %v1022_v32  ;;  %v730_v31 = vmul.f32 0.01, %v672_v0  ;;  %v1025_v36 = vadd.f32 %v1471_v44, %v760_v5  ;;  %v667_v37 = vadd.f32 %v2018_v19, %v666_v33  ;;  %v759_v14 = vmax.f32 %v657_v13, %v727_v12  ;;  %v1480_v44 = vpop.f32.mrf.mxu0 }
 0x1d0   :  { %v1413_v26 = vpop.f32.mrf.mxu1 }
 0x1d1   :  { %1057 = vst [vmem:[#allocation2 + $0xb8] sm:$0xff] %v1025_v36  ;;  %v729_v38 = vmul.f32 0.01, %v667_v37  ;;  %v1024_v39 = vadd.f32 %v953_v53, %v759_v14  ;;  %v682_v41 = vadd.f32 %v1413_v26, %v2018_v19  ;;  %v762_v15 = vmax.f32 %v672_v0, %v730_v31  ;;  %v983_v57 = vpop.f32.mrf.mxu0 }
 0x1d2   :  { %v676_v42 = vpop.f32.mrf.mxu1 }
 0x1d3   :  { %1056 = vst [vmem:[#allocation2 + $0xb0] sm:$0xff] %v1024_v39  ;;  %v732_v34 = vmul.f32 0.01, %v682_v41  ;;  %v1027_v43 = vadd.f32 %v1474_v63, %v762_v15  ;;  %v677_v45 = vadd.f32 %v2018_v19, %v676_v42  ;;  %v761_v46 = vmax.f32 %v667_v37, %v729_v38  ;;  %v1483_v2 = vpop.f32.mrf.mxu0 }
 0x1d4   :  { %v1416_v47 = vpop.f32.mrf.mxu1 }
 0x1d5   :  { %1059 = vst [vmem:[#allocation2 + $0xc8] sm:$0xff] %v1027_v43  ;;  %v731_v16 = vmul.f32 0.01, %v677_v45  ;;  %v1026_v48 = vadd.f32 %v963_v23, %v761_v46  ;;  %v692_v49 = vadd.f32 %v1416_v47, %v2018_v19  ;;  %v764_v50 = vmax.f32 %v682_v41, %v732_v34  ;;  %v993_v10 = vpop.f32.mrf.mxu0 }
 0x1d6   :  { %v686_v51 = vpop.f32.mrf.mxu1 }
 0x1d7   :  { %1058 = vst [vmem:[#allocation2 + $0xc0] sm:$0xff] %v1026_v48  ;;  %v734_v17 = vmul.f32 0.01, %v692_v49  ;;  %v1029_v52 = vadd.f32 %v1477_v30, %v764_v50  ;;  %v687_v53 = vadd.f32 %v2018_v19, %v686_v51  ;;  %v763_v54 = vmax.f32 %v677_v45, %v731_v16 }
 0x1d8   :  { %v1419_v55 = vpop.f32.mrf.mxu1 }
 0x1d9   :  { %1061 = vst [vmem:[#allocation2 + $0xd8] sm:$0xff] %v1029_v52  ;;  %v733_v8 = vmul.f32 0.01, %v687_v53  ;;  %v1028_v58 = vadd.f32 %v973_v22, %v763_v54  ;;  %v702_v59 = vadd.f32 %v1419_v55, %v2018_v19  ;;  %v766_v60 = vmax.f32 %v692_v49, %v734_v17 }
 0x1da   :  { %v696_v61 = vpop.f32.mrf.mxu1 }
 0x1db   :  { %1060 = vst [vmem:[#allocation2 + $0xd0] sm:$0xff] %v1028_v58  ;;  %v736_v21 = vmul.f32 0.01, %v702_v59  ;;  %v1031_v62 = vadd.f32 %v1480_v44, %v766_v60  ;;  %v697_v63 = vadd.f32 %v2018_v19, %v696_v61  ;;  %v765_v1 = vmax.f32 %v687_v53, %v733_v8 }
 0x1dd   :  { %1063 = vst [vmem:[#allocation2 + $0xe8] sm:$0xff] %v1031_v62  ;;  %v735_v3 = vmul.f32 0.01, %v697_v63  ;;  %v1030_v27 = vadd.f32 %v983_v57, %v765_v1  ;;  %v768_v6 = vmax.f32 %v702_v59, %v736_v21 }
 0x1df   :  { %1062 = vst [vmem:[#allocation2 + $0xe0] sm:$0xff] %v1030_v27  ;;  %v1033_v7 = vadd.f32 %v1483_v2, %v768_v6  ;;  %v767_v9 = vmax.f32 %v697_v63, %v735_v3 }
 0x1e1   :  { %1065 = vst [vmem:[#allocation2 + $0xf8] sm:$0xff] %v1033_v7  ;;  %v1032_v35 = vadd.f32 %v993_v10, %v767_v9 }
 0x1e3   :  { %1064 = vst [vmem:[#allocation2 + $0xf0] sm:$0xff] %v1032_v35 }
 0x1e4   :  { %1514 = shalt.err (!%p1511_p4)
}
 0x1e5   :  { %s1526_s26 = smov 128   ;;  %s1527_s27 = smov 8  }
 0x1e6   :  { %1077 = dma.vmem_to_hbm [thread:$0]  %s1072_s24, 4096, %s2092_s6, [#allocation3], %s1526_s26, %s1526_s26, %s1527_s27  }
 0x1e7   :  { %1523 = dma.done.wait [#allocation3], 4096  }
 0x1e8   :  { %1524 = vsyncadd [#allocation3], 4294963200 }
 0x1e9   :  { %1081 = vsyncpa [#allocation3], 1 }

</bundles_post_ra>
